<compile_context>
chip_gen: v6e
topology: v6e:2x2x1
jax: 0.10.0
libtpu: 0.0.40
codegen_flags: <defaults>
</compile_context>

<pallas_src>
import functools

import jax
import jax.numpy as jnp
from jax import lax
from jax.experimental import pallas as pl
from jax.experimental.pallas import tpu as pltpu


def _round_up(n, m):
    return ((n + m - 1) // m) * m


# ----------------------------------------------------------------------------- kernels


def _ahl_kernel_fused(x_ref, w_ref, bias_ref, out_ref, *, T, CP):
    """Fused path (T % 128 != 0): the base-hazard column lives at lane T of the matmul.

      y    = x @ W_aug + bias_row       (TB, CP) f32, MXU with f32 accumulation
      base = y[:, T:T+1]                static lane slice
      hz   = relu(y) on lanes [0, T), 0 elsewhere
      cum  = inclusive prefix sum of hz along lanes (log2(T) roll + masked add)
      out  = (cum + base)[:, :T]        true-width store
    """
    y = jnp.dot(x_ref[...], w_ref[...], preferred_element_type=jnp.float32)
    y = y + bias_ref[...]                                           # f32 bias row
    base = y[:, T:T + 1]                                            # (TB, 1)

    col = lax.broadcasted_iota(jnp.int32, (1, CP), 1)               # lane ids (broadcast)
    hz = jnp.where(col < T, jnp.maximum(y, 0.0), 0.0)               # (TB, CP)

    shift = 1
    while shift < T:                                                # Hillis-Steele scan
        rolled = pltpu.roll(hz, shift=shift, axis=1)                # rolled[:, j] = hz[:, j-shift]
        hz = hz + jnp.where(col >= shift, rolled, 0.0)              # mask the wrap-around
        shift *= 2

    out_ref[...] = (hz[:, :T] + base).astype(out_ref.dtype)         # (TB, T)


def _ahl_kernel_split(x_ref, w_ref, bias_ref, w_base_ref, b_base_ref, out_ref, *, T):
    """Split path (T % 128 == 0): the hazard matmul is already lane-dense, so the base
    hazard is a VPU multiply + XLU row-reduction instead of widening the MXU matmul."""
    x = x_ref[...]
    y = jnp.dot(x, w_ref[...], preferred_element_type=jnp.float32) + bias_ref[...]
    hz = jnp.maximum(y, 0.0)                                        # (TB, T)
    base = jnp.sum(x.astype(jnp.float32) * w_base_ref[...],
                   axis=-1, keepdims=True) + b_base_ref[0]          # (TB, 1)

    col = lax.broadcasted_iota(jnp.int32, (1, T), 1)
    shift = 1
    while shift < T:
        rolled = pltpu.roll(hz, shift=shift, axis=1)
        hz = hz + jnp.where(col >= shift, rolled, 0.0)
        shift *= 2

    out_ref[...] = (hz + base).astype(out_ref.dtype)


# ----------------------------------------------------------------------------- wrapper


def make_additive_hazard_params(w_hazard, b_hazard, w_base, b_base, compute_dtype=None):
    """Fuse layer weights ONCE, outside the hot call path.

    w_hazard: (F, T) = hazard_fc.weight^T      b_hazard: (T,)
    w_base:   (F, 1) = base_hazard_fc.weight^T b_base:   scalar
    """
    F, T = w_hazard.shape
    compute_dtype = jnp.dtype(compute_dtype if compute_dtype is not None
                              else w_hazard.dtype)
    fuse_base = (T % 128) != 0
    CP = max(128, _round_up(T, 128)) if fuse_base else T
    params = {"T": T, "F": F, "CP": CP, "fuse_base": fuse_base,
              "compute_dtype": compute_dtype}
    if fuse_base:
        # Base-hazard column rides in the lane padding of the hazard matmul.
        w_aug = jnp.zeros((F, CP), compute_dtype)
        w_aug = w_aug.at[:, :T].set(w_hazard.astype(compute_dtype))
        w_aug = w_aug.at[:, T].set(w_base.reshape(F).astype(compute_dtype))
        bias = jnp.zeros((1, CP), jnp.float32)
        bias = bias.at[0, :T].set(b_hazard.astype(jnp.float32))
        bias = bias.at[0, T].set(jnp.asarray(b_base, jnp.float32).reshape(()))
        params.update(w=w_aug, bias=bias)
    else:
        # T already lane-dense: keep the matmul at width T; base via VPU row-dot.
        params.update(
            w=w_hazard.astype(compute_dtype),
            bias=b_hazard.astype(jnp.float32).reshape(1, T),
            w_base_row=w_base.reshape(1, F).astype(jnp.float32),
            b_base=jnp.asarray(b_base, jnp.float32).reshape(1),
        )
    return params


def _resident_spec(shape):
    """BlockSpec for a grid-invariant operand: resident in VMEM, single-buffered
    (pl.Buffered(1)) when the installed Pallas supports per-spec pipeline_mode."""
    index_map = lambda i: (0,) * len(shape)
    try:
        return pl.BlockSpec(shape, index_map, pipeline_mode=pl.Buffered(1))
    except (TypeError, AttributeError):
        return pl.BlockSpec(shape, index_map)


def _choose_batch_tile(B, per_row_bytes, resident_bytes, budget_bytes,
                       desired_steps=8, max_tb=1024):
    """Pick TB: aim for >= desired_steps grid steps (pipelining + v7x megacore), keep
    tiles MXU-friendly (256 / 128 multiples), stay within the VMEM budget."""
    if B <= 64:
        return B                                      # full-extent block; single step
    if B >= desired_steps * 256:
        granule = 256                                 # full MXU M on v6e / v7x
    elif B >= desired_steps * 64:
        granule = 128                                 # full MXU M on v5e
    else:
        granule = 8
    tb = min(max_tb, max(granule, _round_up(pl.cdiv(B, desired_steps), granule)))
    while tb > granule and resident_bytes + tb * per_row_bytes > budget_bytes:
        tb = max(granule, _round_up(tb // 2, granule))
    while tb > 8 and resident_bytes + tb * per_row_bytes > budget_bytes:
        tb = max(8, _round_up(tb // 2, 8))
    return tb


def additive_hazard_apply(x, params, *, make_probs_indep=False, out_dtype=None,
                          desired_grid_steps=8, max_block_b=1024):
    """x: (B, F). Returns (B, T) cumulative hazards. x may be float32 or bfloat16."""
    B, F = x.shape
    assert F == params["F"], "feature dimension mismatch"
    T, CP = params["T"], params["CP"]
    compute_dtype = params["compute_dtype"]
    out_dtype = jnp.dtype(out_dtype) if out_dtype is not None else x.dtype
    x = x.astype(compute_dtype)

    if make_probs_indep:
        # TODO(synk): independent-probs path is a plain linear + ReLU; left in XLA.
        w_h = params["w"][:, :T] if params["fuse_base"] else params["w"]
        b_h = params["bias"][0, :T]
        return jax.nn.relu(x @ w_h + b_h.astype(compute_dtype)).astype(out_dtype)

    isz = compute_dtype.itemsize
    osz = out_dtype.itemsize

    # Generation-aware VMEM budgeting (v7x: 64 MiB / TC, v5e / v6e: 128 MiB).
    try:
        vmem_phys = int(pltpu.get_tpu_info().vmem_capacity_bytes)
    except Exception:
        vmem_phys = 64 * 1024 * 1024                  # conservative (v7x per-TC)
    vmem_limit = min((vmem_phys * 5) // 8, 96 * 1024 * 1024)   # ~40 MiB v7x, ~80 MiB v5e/v6e
    vmem_budget = (vmem_limit * 3) // 4

    resident = F * CP * isz + CP * 4                  # fused W + bias row (single-buffered)
    if not params["fuse_base"]:
        resident += F * 4 + 128                       # base-weight row + SMEM scalar
    per_row = (2 * F * isz                            # x tile, double-buffered
               + 2 * T * osz                          # out tile, double-buffered
               + 3 * CP * 4)                          # in-kernel f32 temps (y / hz / rolled)
    # TODO(synk): for very large F, tile F as an extra "arbitrary" grid axis with an
    # f32 accumulator instead of shrinking TB below an MXU-friendly size.
    TB = _choose_batch_tile(B, per_row, resident, vmem_budget,
                            desired_steps=desired_grid_steps, max_tb=max_block_b)
    grid = (pl.cdiv(B, TB),)

    cost = pl.CostEstimate(
        flops=2 * B * F * CP + B * CP * max(1, (T - 1).bit_length()),
        transcendentals=0,
        bytes_accessed=B * F * isz + F * CP * isz + B * T * osz,
    )
    compiler_params = pltpu.CompilerParams(
        dimension_semantics=("parallel",),            # shard batch tiles across TCs (v7x)
        vmem_limit_bytes=int(vmem_limit),
    )

    x_spec = pl.BlockSpec((TB, F), lambda i: (i, 0))
    out_spec = pl.BlockSpec((TB, T), lambda i: (i, 0))   # true-width store, no re-slice

    if params["fuse_base"]:
        kernel = functools.partial(_ahl_kernel_fused, T=T, CP=CP)
        in_specs = [x_spec, _resident_spec((F, CP)), _resident_spec((1, CP))]
        operands = (x, params["w"], params["bias"])
    else:
        kernel = functools.partial(_ahl_kernel_split, T=T)
        in_specs = [x_spec, _resident_spec((F, CP)), _resident_spec((1, CP)),
                    _resident_spec((1, F)),
                    pl.BlockSpec(memory_space=pltpu.MemorySpace.SMEM)]
        operands = (x, params["w"], params["bias"],
                    params["w_base_row"], params["b_base"])

    return pl.pallas_call(
        kernel,
        out_shape=jax.ShapeDtypeStruct((B, T), out_dtype),
        grid=grid,
        in_specs=in_specs,
        out_specs=out_spec,
        compiler_params=compiler_params,
        cost_estimate=cost,
    )(*operands)


def additive_hazard_layer(x, w_hazard, b_hazard, w_base, b_base, **kwargs):
    """One-shot convenience wrapper. For hot/serving paths, call
    make_additive_hazard_params once and reuse the fused params."""
    params = make_additive_hazard_params(w_hazard, b_hazard, w_base, b_base,
                                         compute_dtype=x.dtype)
    return additive_hazard_apply(x, params, **kwargs)


# ----------------------------------------------------------------------------- reference


def _reference(x, w_hazard, b_hazard, w_base, b_base):
    T = w_hazard.shape[1]
    mask = jnp.triu(jnp.ones((T, T), dtype=jnp.float32))   # mask[i, j] = 1 iff i <= j
    hz = jax.nn.relu(x @ w_hazard + b_hazard)               # (B, T)
    base = x @ w_base + b_base                              # (B, 1)
    return hz @ mask + base


if __name__ == "__main__":
    B, F, T = 2, 32, 8          # batch, num_features, max_followup

    key = jax.random.PRNGKey(0)
    k_x, k_wh, k_bh, k_wb, k_bb = jax.random.split(key, 5)

    x = jax.random.normal(k_x, (B, F), dtype=jnp.float32)
    # Deterministic synthetic parameters (nn.Linear weights, stored transposed).
    w_hazard = jax.random.normal(k_wh, (F, T), dtype=jnp.float32) * 0.1
    b_hazard = jax.random.normal(k_bh, (T,), dtype=jnp.float32) * 0.1
    w_base = jax.random.normal(k_wb, (F, 1), dtype=jnp.float32) * 0.1
    b_base = jax.random.normal(k_bb, (), dtype=jnp.float32) * 0.1

    params = make_additive_hazard_params(w_hazard, b_hazard, w_base, b_base)
    out = additive_hazard_apply(x, params)
    out = jax.block_until_ready(out)

    ref = _reference(x, w_hazard, b_hazard, w_base, b_base)
    assert out.shape == (B, T)
    assert jnp.allclose(out, ref, atol=1e-5, rtol=1e-5), "mismatch vs reference"

    print("KERNEL_OK")
</pallas_src>

<mosaic_0001>
module attributes {stable_mosaic.version = 11 : i64} {
  func.func @_ahl_kernel_fused(%arg0: i32, %arg1: memref<2x32xf32, #tpu.memory_space<vmem>>, %arg2: memref<32x128xf32, #tpu.memory_space<vmem>>, %arg3: memref<1x128xf32, #tpu.memory_space<vmem>>, %arg4: memref<2x8xf32, #tpu.memory_space<vmem>>) attributes {dimension_semantics = [#tpu.dimension_semantics<parallel>], iteration_bounds = array<i64: 1>, scalar_prefetch = 0 : i64, scratch_operands = 0 : i64, tpu.core_type = #tpu.core_type<tc>, window_params = [{transform_indices = @transform_0, window_bounds = array<i64: 2, 32>}, {pipeline_mode = #tpu.pipeline_mode<synchronous>, transform_indices = @transform_1, window_bounds = array<i64: 32, 128>}, {pipeline_mode = #tpu.pipeline_mode<synchronous>, transform_indices = @transform_2, window_bounds = array<i64: 1, 128>}, {transform_indices = @transform_3, window_bounds = array<i64: 2, 8>}]} {
    %c0 = arith.constant 0 : index
    %c0_0 = arith.constant 0 : index
    %0 = vector.load %arg1[%c0, %c0_0] : memref<2x32xf32, #tpu.memory_space<vmem>>, vector<2x32xf32>
    %c0_1 = arith.constant 0 : index
    %c0_2 = arith.constant 0 : index
    %1 = vector.load %arg2[%c0_1, %c0_2] : memref<32x128xf32, #tpu.memory_space<vmem>>, vector<32x128xf32>
    %cst = arith.constant dense<0.000000e+00> : vector<2x128xf32>
    %2 = tpu.matmul %0, %1, %cst {dimension_numbers = #tpu.dot_dimension_numbers<[1], [0], [0], [1], [0, 0, 1, 1], [], []>} : vector<2x32xf32>, vector<32x128xf32>, vector<2x128xf32> -> vector<2x128xf32>
    %c0_3 = arith.constant 0 : index
    %c0_4 = arith.constant 0 : index
    %3 = vector.load %arg3[%c0_3, %c0_4] : memref<1x128xf32, #tpu.memory_space<vmem>>, vector<1x128xf32>
    %4 = vector.broadcast %3 : vector<1x128xf32> to vector<2x128xf32>
    %5 = arith.addf %2, %4 : vector<2x128xf32>
    %6 = vector.extract_strided_slice %5 {offsets = [0, 8], sizes = [2, 1], strides = [1, 1]} : vector<2x128xf32> to vector<2x1xf32>
    %7 = tpu.iota {dimensions = array<i32: 1>} : vector<1x128xi32>
    %c8_i32 = arith.constant 8 : i32
    %8 = vector.broadcast %c8_i32 : i32 to vector<1x128xi32>
    %9 = arith.cmpi slt, %7, %8 : vector<1x128xi32>
    %cst_5 = arith.constant 0.000000e+00 : f32
    %10 = vector.broadcast %cst_5 : f32 to vector<2x128xf32>
    %11 = arith.maximumf %5, %10 : vector<2x128xf32>
    %cst_6 = arith.constant 0.000000e+00 : f32
    %12 = vector.shape_cast %9 : vector<1x128xi1> to vector<1x128xi1>
    %13 = vector.broadcast %12 : vector<1x128xi1> to vector<2x128xi1>
    %14 = vector.broadcast %cst_6 : f32 to vector<2x128xf32>
    %15 = arith.select %13, %11, %14 : vector<2x128xi1>, vector<2x128xf32>
    %c1_i32 = arith.constant 1 : i32
    %16 = tpu.dynamic_rotate %15 by %c1_i32 dim 1 : vector<2x128xf32>, i32 -> vector<2x128xf32>
    %c1_i32_7 = arith.constant 1 : i32
    %17 = vector.broadcast %c1_i32_7 : i32 to vector<1x128xi32>
    %18 = arith.cmpi sge, %7, %17 : vector<1x128xi32>
    %cst_8 = arith.constant 0.000000e+00 : f32
    %19 = vector.shape_cast %18 : vector<1x128xi1> to vector<1x128xi1>
    %20 = vector.broadcast %19 : vector<1x128xi1> to vector<2x128xi1>
    %21 = vector.broadcast %cst_8 : f32 to vector<2x128xf32>
    %22 = arith.select %20, %16, %21 : vector<2x128xi1>, vector<2x128xf32>
    %23 = arith.addf %15, %22 : vector<2x128xf32>
    %c2_i32 = arith.constant 2 : i32
    %24 = tpu.dynamic_rotate %23 by %c2_i32 dim 1 : vector<2x128xf32>, i32 -> vector<2x128xf32>
    %c2_i32_9 = arith.constant 2 : i32
    %25 = vector.broadcast %c2_i32_9 : i32 to vector<1x128xi32>
    %26 = arith.cmpi sge, %7, %25 : vector<1x128xi32>
    %cst_10 = arith.constant 0.000000e+00 : f32
    %27 = vector.shape_cast %26 : vector<1x128xi1> to vector<1x128xi1>
    %28 = vector.broadcast %27 : vector<1x128xi1> to vector<2x128xi1>
    %29 = vector.broadcast %cst_10 : f32 to vector<2x128xf32>
    %30 = arith.select %28, %24, %29 : vector<2x128xi1>, vector<2x128xf32>
    %31 = arith.addf %23, %30 : vector<2x128xf32>
    %c4_i32 = arith.constant 4 : i32
    %32 = tpu.dynamic_rotate %31 by %c4_i32 dim 1 : vector<2x128xf32>, i32 -> vector<2x128xf32>
    %c4_i32_11 = arith.constant 4 : i32
    %33 = vector.broadcast %c4_i32_11 : i32 to vector<1x128xi32>
    %34 = arith.cmpi sge, %7, %33 : vector<1x128xi32>
    %cst_12 = arith.constant 0.000000e+00 : f32
    %35 = vector.shape_cast %34 : vector<1x128xi1> to vector<1x128xi1>
    %36 = vector.broadcast %35 : vector<1x128xi1> to vector<2x128xi1>
    %37 = vector.broadcast %cst_12 : f32 to vector<2x128xf32>
    %38 = arith.select %36, %32, %37 : vector<2x128xi1>, vector<2x128xf32>
    %39 = arith.addf %31, %38 : vector<2x128xf32>
    %40 = vector.extract_strided_slice %39 {offsets = [0, 0], sizes = [2, 8], strides = [1, 1]} : vector<2x128xf32> to vector<2x8xf32>
    %41 = vector.broadcast %6 : vector<2x1xf32> to vector<2x8xf32>
    %42 = arith.addf %40, %41 : vector<2x8xf32>
    %c0_13 = arith.constant 0 : index
    %c0_14 = arith.constant 0 : index
    %43 = vector.load %arg4[%c0_13, %c0_14] : memref<2x8xf32, #tpu.memory_space<vmem>>, vector<2x8xf32>
    tpu.vector_store %arg4[%c0_13, %c0_14], %42 {strides = array<i32>} : memref<2x8xf32, #tpu.memory_space<vmem>>, vector<2x8xf32>,
    return
  }
  func.func @transform_0(%arg0: i32) -> (i32, i32) {
    %c0_i32 = arith.constant 0 : i32
    %c0_i32_0 = arith.constant 0 : i32
    return %arg0, %c0_i32 : i32, i32
  }
  func.func @transform_1(%arg0: i32) -> (i32, i32) {
    %c0_i32 = arith.constant 0 : i32
    %c0_i32_0 = arith.constant 0 : i32
    %c0_i32_1 = arith.constant 0 : i32
    return %c0_i32, %c0_i32_0 : i32, i32
  }
  func.func @transform_2(%arg0: i32) -> (i32, i32) {
    %c0_i32 = arith.constant 0 : i32
    %c0_i32_0 = arith.constant 0 : i32
    %c0_i32_1 = arith.constant 0 : i32
    return %c0_i32, %c0_i32_0 : i32, i32
  }
  func.func @transform_3(%arg0: i32) -> (i32, i32) {
    %c0_i32 = arith.constant 0 : i32
    %c0_i32_0 = arith.constant 0 : i32
    return %arg0, %c0_i32 : i32, i32
  }
}

</mosaic_0001>

<bundles_post_ra>
// kernel: tpu_custom_call.1
= control target key start
LH: loop header
LB: loop body
LE: loop exit
PB: predicated region body
PF: predicated region fallthrough
CT: control target
= control target key end

     0   :  { %8 = vsyncpa [#allocation3], 0  ;;  %s319_s0 = inlined_call_operand.hbm [shape: f32[2,32], index: 0, kind: input, shape index: {}]   ;;  %s320_s1 = inlined_call_operand.hbm [shape: f32[32,128], index: 1, kind: input, shape index: {}]   ;;  %s321_s2 = inlined_call_operand.vmem [shape: f32[1,128], index: 2, kind: input, shape index: {}]   ;;  %s322_s3 = inlined_call_operand.hbm [shape: f32[2,8], index: 3, kind: output, shape index: {}]  }
   0x1   :  { %9 = vsyncpa [#allocation6], 0 }
   0x2   :  { %10 = vsyncpa [#allocation4], 0  ;;  %s276_s12 = smov [#allocation2]   ;;  %s277_s14 = smov [#allocation5]  }
   0x3   :  { %s17_s13 = sshll.u32 %s276_s12, 4  ;;  %s26_s15 = sshll.u32 %s277_s14, 4  ;;  %s18_s13 = int_to_ptr.vmem [resolvable:$true] %s17_s13  ;;  %s27_s15 = int_to_ptr.vmem [resolvable:$true] %s26_s15 }
   0x4   :  { %s218_s16 = scalar_lea.vmem %s18_s13, 32  ;;  %p223_p1 = scmp.lt.s32.totalorder %s18_s13, %s18_s13 }
   0x5   :  { %p219_p0 = scmp.ne.s32.totalorder %s18_s13, %s218_s16  ;;  %p224_p2 = scmp.lt.s32.totalorder %s218_s16, %s218_s16 }
   0x7   :  { %p225_p3 = por %p224_p2, %p223_p1 }
   0x9   :  { %p226_p4 = pnand %p225_p3, %p219_p0 }
   0xb   :  { %229 = shalt.err (!%p226_p4)
}
   0xc   :  { %20 = dma.hbm_to_vmem [thread:$0]  %s319_s0, 32, %s18_s13, [#allocation3]  }
   0xd   :  { %s238_s19 = scalar_lea.vmem %s27_s15, 512  ;;  %p243_p6 = scmp.lt.s32.totalorder %s27_s15, %s27_s15 }
   0xe   :  { %p239_p5 = scmp.ne.s32.totalorder %s27_s15, %s238_s19  ;;  %p244_p7 = scmp.lt.s32.totalorder %s238_s19, %s238_s19 }
  0x10   :  { %p245_p8 = por %p244_p7, %p243_p6 }
  0x12   :  { %p246_p9 = pnand %p245_p8, %p239_p5 }
  0x14   :  { %249 = shalt.err (!%p246_p9)
}
  0x15   :  { %s278_s20 = smov 128   ;;  %s279_s21 = smov 8  }
  0x16   :  { %32 = dma.hbm_to_vmem [thread:$0]  %s320_s1, 512, %s27_s15, [#allocation6], %s278_s20, %s278_s20, %s279_s21  }
  0x17   :  { %270 = dma.done.wait [#allocation3], 32  }
  0x18   :  { %271 = vsyncadd [#allocation3], 4294967264 }
  0x19   :  { %272 = dma.done.wait [#allocation6], 512  }
  0x1a   :  { %273 = vsyncadd [#allocation6], 4294966784  ;;  %v280_v0 = vmov 0.0   ;;  %vm281_vm0 = vmmov 0   ;;  %v45_v1 = vld [vmem:[#allocation5 + $0x18] sm:$0xff]  ;;  %v44_v2 = vld [vmem:[#allocation5 + $0x10] sm:$0xff]  ;;  %v127_v7 = vlaneseq }
  0x1b   :  { %186 = vmatprep.subr.mxu0 %v280_v0  ;;  %194 = vmatprep.mubr.msk.f32.mxu0 %vm281_vm0, %v280_v0  ;;  %v43_v3 = vld [vmem:[#allocation5 + $0x8] sm:$0xff]  ;;  %v42_v4 = vld [vmem:[#allocation5] sm:$0xff]  ;;  %v41_v5 = vld [vmem:[#allocation2] sm:$0x3]  ;;  %vm53_vm1 = vcmask 261120   ;;  %v282_v6 = vmov 8  }
  0x1c   :  { %187 = vmatpush3.msra.mxu0 %v45_v1  ;;  %208 = vset.pattern.permute.xlu1 %v282_v6  ;;  %v179_v8 = vld [vmem:[%s321_s2] ss:$0 sm:$0xff]  ;;  %v128_v9 = vand.u32 127, %v127_v7  ;;  %s283_s24 = smov 1   ;;  %s284_s25 = smov 2   ;;  %vm161_vm6 = vcmask 58368  }
  0x1d   :  { %188 = vmatprep.subr.mxu0 %v280_v0  ;;  %209 = vset.pattern.permute.xlu0 %v282_v6  ;;  %s285_s2 = smov 4   ;;  %s286_s26 = smov [#allocation7]  }
  0x1e   :  { %189 = vmatpush3.msra.mxu0 %v44_v2  ;;  %vm129_vm2 = vcmp.lt.s32.totalorder %v128_v9, 8  ;;  %vm136_vm3 = vcmp.ge.s32.totalorder %v128_v9, 1  ;;  %vm143_vm4 = vcmp.ge.s32.totalorder %v128_v9, 2  ;;  %vm150_vm5 = vcmp.ge.s32.totalorder %v128_v9, 4  ;;  %s169_s27 = sshll.u32 %s286_s26, 4  ;;  %s170_s27 = int_to_ptr.vmem [resolvable:$true] %s169_s27 }
  0x1f   :  { %190 = vmatprep.subr.mxu0 %v280_v0  ;;  %s250_s28 = scalar_lea.vmem %s170_s27, 32  ;;  %p255_p11 = scmp.lt.s32.totalorder %s170_s27, %s170_s27 }
  0x20   :  { %191 = vmatpush3.msra.mxu0 %v43_v3  ;;  %p251_p10 = scmp.ne.s32.totalorder %s170_s27, %s250_s28  ;;  %p256_p12 = scmp.lt.s32.totalorder %s250_s28, %s250_s28 }
  0x21   :  { %192 = vmatprep.subr.mxu0 %v280_v0 }
  0x22   :  { %193 = vmatpush3.msra.mxu0 %v42_v4  ;;  %p257_p13 = por %p256_p12, %p255_p11 }
  0x23   :  { %195 = vmatmul.mubr.msk.f32.vlgmr.msra.gmra.mxu0 %vm53_vm1, %v41_v5 }
  0x24   :  { %p258_p0 = pnand %p257_p13, %p251_p10 }
  0xe3   :  { %v123_v10 = vpop.f32.mrf.mxu0 }
  0xe4   :  { %v124_v11 = vadd.f32 %v179_v8, %v123_v10 }
  0xe5   :  { %v196_v12 = vpop.f32.mrf.mxu0 }
  0xe6   :  { %157 = vperm.xlu1 %208, %v124_v11   ;;  %v130_v13 = vmax.f32 %v124_v11, 0.0 }
  0xe8   :  { %v133_v14 = vsel %vm129_vm2, %v130_v13, 0.0 }
  0xe9   :  { %134 = vrot.lane.b32.xlu0 %v133_v14, %s283_s24 }
 0x15b   :  { %v135_v15 = vpop.permute.xlu0 %134 }
 0x15c   :  { %v139_v16 = vsel %vm136_vm3, %v135_v15, 0.0 }
 0x15d   :  { %v140_v17 = vadd.f32 %v139_v16, %v133_v14 }
 0x15f   :  { %141 = vrot.lane.b32.xlu0 %v140_v17, %s284_s25 }
 0x161   :  { %v158_v21 = vpop.permute.xlu1 %157 }
 0x1d1   :  { %v142_v18 = vpop.permute.xlu0 %141 }
 0x1d2   :  { %v146_v19 = vsel %vm143_vm4, %v142_v18, 0.0 }
 0x1d3   :  { %v147_v20 = vadd.f32 %v146_v19, %v140_v17 }
 0x1d5   :  { %148 = vrot.lane.b32.xlu1 %v147_v20, %s285_s2 }
 0x247   :  { %v149_v22 = vpop.permute.xlu1 %148 }
 0x248   :  { %v153_v23 = vsel %vm150_vm5, %v149_v22, 0.0 }
 0x249   :  { %v154_v24 = vadd.f32 %v153_v23, %v147_v20 }
 0x24b   :  { %v160_v25 = vadd.f32 %v158_v21, %v154_v24 }
 0x24d   :  { %162 = vst.msk [vmem:[#allocation7] sm:$0x3] %vm161_vm6, %v160_v25 }
 0x24e   :  { %261 = shalt.err (!%p258_p0)
}
 0x24f   :  { %172 = dma.vmem_to_hbm [thread:$0]  %s170_s27, 32, %s322_s3, [#allocation4]  }
 0x250   :  { %274 = dma.done.wait [#allocation4], 32  }
 0x251   :  { %275 = vsyncadd [#allocation4], 4294967264 }
 0x252   :  { %176 = vsyncpa [#allocation3], 1 }
 0x253   :  { %177 = vsyncpa [#allocation6], 1 }
 0x254   :  { %178 = vsyncpa [#allocation4], 1 }

</bundles_post_ra>
